<compile_context>
chip_gen: v6e
topology: v6e:2x2x1
jax: 0.10.0
libtpu: 0.0.40
codegen_flags: <defaults>
</compile_context>

<pallas_src>
import functools

import jax
import jax.numpy as jnp
from jax.experimental import pallas as pl
from jax.experimental.pallas import tpu as pltpu


def _lstm_kernel(gx_ref, whh_ref, h0_ref, c0_ref, out_ref, cy_ref,
                 h_sc, c_sc, *, hidden_size, t_blk):
    t_idx = pl.program_id(1)

    # Initialize recurrent state from (h0, c0) at the start of each batch
    # block's time sweep (time is the fastest-varying grid axis).
    @pl.when(t_idx == 0)
    def _():
        h_sc[...] = h0_ref[...].astype(jnp.float32)
        c_sc[...] = c0_ref[...].astype(jnp.float32)

    whh = whh_ref[...]          # (H, 4H), resident in VMEM across the grid
    H = hidden_size

    def step(tt, carry):
        h, c = carry
        # Only the recurrent projection is on the per-step critical path; the
        # input projection (incl. bias) was precomputed for all timesteps.
        gates = gx_ref[tt] + jnp.dot(h, whh,
                                     preferred_element_type=jnp.float32)
        # TODO(synk): with H not a multiple of 128 these lane slices cut inside
        # a vreg; padding H to 128 would make each gate a clean vreg set.
        ingate     = jax.nn.sigmoid(gates[:, 0 * H:1 * H])
        forgetgate = jax.nn.sigmoid(gates[:, 1 * H:2 * H])
        cellgate   = jnp.tanh(gates[:, 2 * H:3 * H])
        outgate    = jax.nn.sigmoid(gates[:, 3 * H:4 * H])
        c_new = forgetgate * c + ingate * cellgate
        h_new = outgate * jnp.tanh(c_new)
        # VMEM store into the output block; HBM writeback happens once per
        # grid step for the whole (t_blk, B_blk, H) slab.
        out_ref[tt] = h_new.astype(out_ref.dtype)
        return h_new, c_new

    h, c = jax.lax.fori_loop(0, t_blk, step, (h_sc[...], c_sc[...]),
                             unroll=True)
    h_sc[...] = h
    c_sc[...] = c

    @pl.when(t_idx == pl.num_programs(1) - 1)
    def _():
        cy_ref[...] = c.astype(cy_ref.dtype)


def lstm_forward(x, hidden, ctx=None, ctx_mask=None, *, params,
                 t_blk=8, b_blk=None):
    """Pallas LSTM forward.

    x:      (B, T, D)   batch-first input
    hidden: tuple (h0, c0), each (B, H)
    ctx, ctx_mask: unused (kept for API parity with the PyTorch module)
    params: dict with w_ih (4H, D), w_hh (4H, H), b_ih (4H,), b_hh (4H,)
    returns (output (B, T, H), (hy, cy))
    """
    h0, c0 = hidden
    B, T, D = x.shape
    H = h0.shape[-1]

    wih_t = params["w_ih"].T                       # (D, 4H)
    whh_t = params["w_hh"].T                       # (H, 4H)
    bias = (params["b_ih"] + params["b_hh"]).astype(jnp.float32)

    # Hoist the input projection out of the recurrence: one (B*T, D)x(D, 4H)
    # matmul for all timesteps, emitted directly in time-major (T, B, 4H)
    # layout so no separate HBM transpose pass over x is needed.
    gates_x = jnp.einsum(
        "btd,dg->tbg", x.astype(jnp.float32), wih_t.astype(jnp.float32),
        precision=jax.lax.Precision.HIGHEST) + bias        # (T, B, 4H), f32

    # Time block: amortize per-grid-step overhead; must divide T.
    t_blk = max(1, min(t_blk, T))
    while T % t_blk:
        t_blk -= 1

    # Batch block: only useful for v7x megacore sharding (2 TCs); keep the
    # whole batch per block by default.  Must divide B and be sublane-friendly.
    if b_blk is None or b_blk >= B or B % b_blk or b_blk % 8:
        b_blk = B

    grid = (B // b_blk, T // t_blk)
    kernel = functools.partial(_lstm_kernel, hidden_size=H, t_blk=t_blk)

    out_tm, cy = pl.pallas_call(
        kernel,
        out_shape=(
            jax.ShapeDtypeStruct((T, B, H), x.dtype),   # per-step h, time-major
            jax.ShapeDtypeStruct((B, H), c0.dtype),     # final c
        ),
        grid_spec=pltpu.PrefetchScalarGridSpec(
            num_scalar_prefetch=0,
            grid=grid,
            in_specs=[
                # Precomputed input gates for t_blk timesteps.
                pl.BlockSpec((t_blk, b_blk, 4 * H), lambda b, t: (t, b, 0)),
                # W_hh^T, resident across the whole grid.
                # TODO(synk): at large H, set pipeline_mode=pl.Buffered(1) and
                # feed bf16 MXU operands to stay within v7x's 64 MiB VMEM.
                pl.BlockSpec((H, 4 * H), lambda b, t: (0, 0)),
                pl.BlockSpec((b_blk, H), lambda b, t: (b, 0)),   # h0
                pl.BlockSpec((b_blk, H), lambda b, t: (b, 0)),   # c0
            ],
            out_specs=[
                pl.BlockSpec((t_blk, b_blk, H), lambda b, t: (t, b, 0)),
                pl.BlockSpec((b_blk, H), lambda b, t: (b, 0)),   # cy (resident)
            ],
            scratch_shapes=[
                pltpu.VMEM((b_blk, H), jnp.float32),             # h state
                pltpu.VMEM((b_blk, H), jnp.float32),             # c state
            ],
        ),
        compiler_params=pltpu.CompilerParams(
            # Time axis is a true recurrence -> "arbitrary"; batch shards are
            # independent -> "parallel" (megacore on v7x).
            dimension_semantics=("parallel", "arbitrary"),
        ),
    )(gates_x, whh_t, h0, c0)

    output = jnp.transpose(out_tm, (1, 0, 2))   # back to batch-first (B, T, H)
    hy = output[:, -1, :]                       # final h == last output step
    return output, (hy, cy)


def _reference_lstm(x, hidden, params):
    """Pure-JAX reference matching the PyTorch module semantics."""
    h, c = hidden
    wih_t = params["w_ih"].T
    whh_t = params["w_hh"].T
    b = params["b_ih"] + params["b_hh"]
    H = h.shape[-1]
    hp = jax.lax.Precision.HIGHEST
    outs = []
    for t in range(x.shape[1]):
        gates = (jnp.dot(x[:, t, :], wih_t, precision=hp)
                 + jnp.dot(h, whh_t, precision=hp) + b)
        i = jax.nn.sigmoid(gates[:, 0 * H:1 * H])
        f = jax.nn.sigmoid(gates[:, 1 * H:2 * H])
        g = jnp.tanh(gates[:, 2 * H:3 * H])
        o = jax.nn.sigmoid(gates[:, 3 * H:4 * H])
        c = f * c + i * g
        h = o * jnp.tanh(c)
        outs.append(h)
    return jnp.stack(outs, axis=1), (h, c)


if __name__ == "__main__":
    # Small, TPU-friendly shapes: batch=8, seq=8, input_size=16, hidden=32.
    B, T, D, H = 8, 8, 16, 32

    key = jax.random.PRNGKey(0)
    k = jax.random.split(key, 8)

    # Deterministic parameter init (PyTorch Linear-style uniform bounds).
    bound_ih = 1.0 / (D ** 0.5)
    bound_hh = 1.0 / (H ** 0.5)
    params = {
        "w_ih": jax.random.uniform(k[0], (4 * H, D), jnp.float32, -bound_ih, bound_ih),
        "b_ih": jax.random.uniform(k[1], (4 * H,), jnp.float32, -bound_ih, bound_ih),
        "w_hh": jax.random.uniform(k[2], (4 * H, H), jnp.float32, -bound_hh, bound_hh),
        "b_hh": jax.random.uniform(k[3], (4 * H,), jnp.float32, -bound_hh, bound_hh),
    }

    x = jax.random.normal(k[4], (B, T, D), jnp.float32)
    h0 = jax.random.normal(k[5], (B, H), jnp.float32)
    c0 = jax.random.normal(k[6], (B, H), jnp.float32)
    ctx = jax.random.normal(k[7], (B, T, H), jnp.float32)   # unused, like the module

    out, (hy, cy) = lstm_forward(x, (h0, c0), ctx, params=params)
    out = jax.block_until_ready(out)
    hy = jax.block_until_ready(hy)
    cy = jax.block_until_ready(cy)

    # Verify against pure-JAX reference.
    ref_out, (ref_hy, ref_cy) = _reference_lstm(x, (h0, c0), params)
    assert out.shape == (B, T, H)
    assert jnp.allclose(out, ref_out, atol=1e-5, rtol=1e-5)
    assert jnp.allclose(hy, ref_hy, atol=1e-5, rtol=1e-5)
    assert jnp.allclose(cy, ref_cy, atol=1e-5, rtol=1e-5)

    print("KERNEL_OK")
</pallas_src>

<mosaic_0001>
module attributes {stable_mosaic.version = 11 : i64} {
  func.func @_lstm_kernel(%arg0: i32, %arg1: i32, %arg2: memref<8x8x128xf32, #tpu.memory_space<vmem>>, %arg3: memref<32x128xf32, #tpu.memory_space<vmem>>, %arg4: memref<8x32xf32, #tpu.memory_space<vmem>>, %arg5: memref<8x32xf32, #tpu.memory_space<vmem>>, %arg6: memref<8x8x32xf32, #tpu.memory_space<vmem>>, %arg7: memref<8x32xf32, #tpu.memory_space<vmem>>, %arg8: memref<8x32xf32, #tpu.memory_space<vmem>>, %arg9: memref<8x32xf32, #tpu.memory_space<vmem>>) attributes {dimension_semantics = [#tpu.dimension_semantics<parallel>, #tpu.dimension_semantics<arbitrary>], iteration_bounds = array<i64: 1, 1>, scalar_prefetch = 0 : i64, scratch_operands = 2 : i64, tpu.core_type = #tpu.core_type<tc>, window_params = [{transform_indices = @transform_0, window_bounds = array<i64: 8, 8, 128>}, {pipeline_mode = #tpu.pipeline_mode<synchronous>, transform_indices = @transform_1, window_bounds = array<i64: 32, 128>}, {transform_indices = @transform_2, window_bounds = array<i64: 8, 32>}, {transform_indices = @transform_3, window_bounds = array<i64: 8, 32>}, {transform_indices = @transform_4, window_bounds = array<i64: 8, 8, 32>}, {transform_indices = @transform_5, window_bounds = array<i64: 8, 32>}]} {
    %c0_i32 = arith.constant 0 : i32
    %0 = arith.cmpi eq, %arg1, %c0_i32 : i32
    %1 = arith.extui %0 : i1 to i32
    %c0_i32_0 = arith.constant 0 : i32
    %2 = arith.cmpi ne, %1, %c0_i32_0 : i32
    scf.if %2 {
      %c0_76 = arith.constant 0 : index
      %c0_77 = arith.constant 0 : index
      %283 = vector.load %arg4[%c0_76, %c0_77] : memref<8x32xf32, #tpu.memory_space<vmem>>, vector<8x32xf32>
      %c0_78 = arith.constant 0 : index
      %c0_79 = arith.constant 0 : index
      %284 = vector.load %arg8[%c0_78, %c0_79] : memref<8x32xf32, #tpu.memory_space<vmem>>, vector<8x32xf32>
      tpu.vector_store %arg8[%c0_78, %c0_79], %283 {strides = array<i32>} : memref<8x32xf32, #tpu.memory_space<vmem>>, vector<8x32xf32>,
      %c0_80 = arith.constant 0 : index
      %c0_81 = arith.constant 0 : index
      %285 = vector.load %arg5[%c0_80, %c0_81] : memref<8x32xf32, #tpu.memory_space<vmem>>, vector<8x32xf32>
      %c0_82 = arith.constant 0 : index
      %c0_83 = arith.constant 0 : index
      %286 = vector.load %arg9[%c0_82, %c0_83] : memref<8x32xf32, #tpu.memory_space<vmem>>, vector<8x32xf32>
      tpu.vector_store %arg9[%c0_82, %c0_83], %285 {strides = array<i32>} : memref<8x32xf32, #tpu.memory_space<vmem>>, vector<8x32xf32>,
    } else {
    }
    %c0 = arith.constant 0 : index
    %c0_1 = arith.constant 0 : index
    %3 = vector.load %arg3[%c0, %c0_1] : memref<32x128xf32, #tpu.memory_space<vmem>>, vector<32x128xf32>
    %c0_2 = arith.constant 0 : index
    %c0_3 = arith.constant 0 : index
    %4 = vector.load %arg8[%c0_2, %c0_3] : memref<8x32xf32, #tpu.memory_space<vmem>>, vector<8x32xf32>
    %c0_4 = arith.constant 0 : index
    %c0_5 = arith.constant 0 : index
    %5 = vector.load %arg9[%c0_4, %c0_5] : memref<8x32xf32, #tpu.memory_space<vmem>>, vector<8x32xf32>
    %c0_i32_6 = arith.constant 0 : i32
    %6 = arith.index_cast %c0_i32_6 : i32 to index
    %c0_7 = arith.constant 0 : index
    %c0_8 = arith.constant 0 : index
    %7 = vector.load %arg2[%6, %c0_7, %c0_8] : memref<8x8x128xf32, #tpu.memory_space<vmem>>, vector<1x8x128xf32>
    %8 = vector.shape_cast %7 : vector<1x8x128xf32> to vector<8x128xf32>
    %cst = arith.constant dense<0.000000e+00> : vector<8x128xf32>
    %9 = tpu.matmul %4, %3, %cst {dimension_numbers = #tpu.dot_dimension_numbers<[1], [0], [0], [1], [0, 0, 1, 1], [], []>} : vector<8x32xf32>, vector<32x128xf32>, vector<8x128xf32> -> vector<8x128xf32>
    %10 = arith.addf %8, %9 : vector<8x128xf32>
    %11 = vector.extract_strided_slice %10 {offsets = [0, 0], sizes = [8, 32], strides = [1, 1]} : vector<8x128xf32> to vector<8x32xf32>
    %12 = arith.negf %11 : vector<8x32xf32>
    %13 = math.exp %12 : vector<8x32xf32>
    %cst_9 = arith.constant 1.000000e+00 : f32
    %14 = vector.broadcast %cst_9 : f32 to vector<8x32xf32>
    %15 = arith.addf %14, %13 : vector<8x32xf32>
    %16 = arith.divf %14, %15 : vector<8x32xf32>
    %17 = vector.extract_strided_slice %10 {offsets = [0, 32], sizes = [8, 32], strides = [1, 1]} : vector<8x128xf32> to vector<8x32xf32>
    %18 = arith.negf %17 : vector<8x32xf32>
    %19 = math.exp %18 : vector<8x32xf32>
    %cst_10 = arith.constant 1.000000e+00 : f32
    %20 = vector.broadcast %cst_10 : f32 to vector<8x32xf32>
    %21 = arith.addf %20, %19 : vector<8x32xf32>
    %22 = arith.divf %20, %21 : vector<8x32xf32>
    %23 = vector.extract_strided_slice %10 {offsets = [0, 64], sizes = [8, 32], strides = [1, 1]} : vector<8x128xf32> to vector<8x32xf32>
    %24 = math.tanh %23 : vector<8x32xf32>
    %25 = vector.extract_strided_slice %10 {offsets = [0, 96], sizes = [8, 32], strides = [1, 1]} : vector<8x128xf32> to vector<8x32xf32>
    %26 = arith.negf %25 : vector<8x32xf32>
    %27 = math.exp %26 : vector<8x32xf32>
    %cst_11 = arith.constant 1.000000e+00 : f32
    %28 = vector.broadcast %cst_11 : f32 to vector<8x32xf32>
    %29 = arith.addf %28, %27 : vector<8x32xf32>
    %30 = arith.divf %28, %29 : vector<8x32xf32>
    %31 = arith.mulf %22, %5 : vector<8x32xf32>
    %32 = arith.mulf %16, %24 : vector<8x32xf32>
    %33 = arith.addf %31, %32 : vector<8x32xf32>
    %34 = math.tanh %33 : vector<8x32xf32>
    %35 = arith.mulf %30, %34 : vector<8x32xf32>
    %36 = arith.index_cast %c0_i32_6 : i32 to index
    %c0_12 = arith.constant 0 : index
    %c0_13 = arith.constant 0 : index
    %37 = vector.load %arg6[%36, %c0_12, %c0_13] : memref<8x8x32xf32, #tpu.memory_space<vmem>>, vector<1x8x32xf32>
    %38 = vector.shape_cast %37 : vector<1x8x32xf32> to vector<8x32xf32>
    %39 = vector.shape_cast %35 : vector<8x32xf32> to vector<1x8x32xf32>
    tpu.vector_store %arg6[%36, %c0_12, %c0_13], %39 {strides = array<i32>} : memref<8x8x32xf32, #tpu.memory_space<vmem>>, vector<1x8x32xf32>,
    %c1_i32 = arith.constant 1 : i32
    %40 = arith.index_cast %c1_i32 : i32 to index
    %c0_14 = arith.constant 0 : index
    %c0_15 = arith.constant 0 : index
    %41 = vector.load %arg2[%40, %c0_14, %c0_15] : memref<8x8x128xf32, #tpu.memory_space<vmem>>, vector<1x8x128xf32>
    %42 = vector.shape_cast %41 : vector<1x8x128xf32> to vector<8x128xf32>
    %cst_16 = arith.constant dense<0.000000e+00> : vector<8x128xf32>
    %43 = tpu.matmul %35, %3, %cst_16 {dimension_numbers = #tpu.dot_dimension_numbers<[1], [0], [0], [1], [0, 0, 1, 1], [], []>} : vector<8x32xf32>, vector<32x128xf32>, vector<8x128xf32> -> vector<8x128xf32>
    %44 = arith.addf %42, %43 : vector<8x128xf32>
    %45 = vector.extract_strided_slice %44 {offsets = [0, 0], sizes = [8, 32], strides = [1, 1]} : vector<8x128xf32> to vector<8x32xf32>
    %46 = arith.negf %45 : vector<8x32xf32>
    %47 = math.exp %46 : vector<8x32xf32>
    %cst_17 = arith.constant 1.000000e+00 : f32
    %48 = vector.broadcast %cst_17 : f32 to vector<8x32xf32>
    %49 = arith.addf %48, %47 : vector<8x32xf32>
    %50 = arith.divf %48, %49 : vector<8x32xf32>
    %51 = vector.extract_strided_slice %44 {offsets = [0, 32], sizes = [8, 32], strides = [1, 1]} : vector<8x128xf32> to vector<8x32xf32>
    %52 = arith.negf %51 : vector<8x32xf32>
    %53 = math.exp %52 : vector<8x32xf32>
    %cst_18 = arith.constant 1.000000e+00 : f32
    %54 = vector.broadcast %cst_18 : f32 to vector<8x32xf32>
    %55 = arith.addf %54, %53 : vector<8x32xf32>
    %56 = arith.divf %54, %55 : vector<8x32xf32>
    %57 = vector.extract_strided_slice %44 {offsets = [0, 64], sizes = [8, 32], strides = [1, 1]} : vector<8x128xf32> to vector<8x32xf32>
    %58 = math.tanh %57 : vector<8x32xf32>
    %59 = vector.extract_strided_slice %44 {offsets = [0, 96], sizes = [8, 32], strides = [1, 1]} : vector<8x128xf32> to vector<8x32xf32>
    %60 = arith.negf %59 : vector<8x32xf32>
    %61 = math.exp %60 : vector<8x32xf32>
    %cst_19 = arith.constant 1.000000e+00 : f32
    %62 = vector.broadcast %cst_19 : f32 to vector<8x32xf32>
    %63 = arith.addf %62, %61 : vector<8x32xf32>
    %64 = arith.divf %62, %63 : vector<8x32xf32>
    %65 = arith.mulf %56, %33 : vector<8x32xf32>
    %66 = arith.mulf %50, %58 : vector<8x32xf32>
    %67 = arith.addf %65, %66 : vector<8x32xf32>
    %68 = math.tanh %67 : vector<8x32xf32>
    %69 = arith.mulf %64, %68 : vector<8x32xf32>
    %70 = arith.index_cast %c1_i32 : i32 to index
    %c0_20 = arith.constant 0 : index
    %c0_21 = arith.constant 0 : index
    %71 = vector.load %arg6[%70, %c0_20, %c0_21] : memref<8x8x32xf32, #tpu.memory_space<vmem>>, vector<1x8x32xf32>
    %72 = vector.shape_cast %71 : vector<1x8x32xf32> to vector<8x32xf32>
    %73 = vector.shape_cast %69 : vector<8x32xf32> to vector<1x8x32xf32>
    tpu.vector_store %arg6[%70, %c0_20, %c0_21], %73 {strides = array<i32>} : memref<8x8x32xf32, #tpu.memory_space<vmem>>, vector<1x8x32xf32>,
    %c2_i32 = arith.constant 2 : i32
    %74 = arith.index_cast %c2_i32 : i32 to index
    %c0_22 = arith.constant 0 : index
    %c0_23 = arith.constant 0 : index
    %75 = vector.load %arg2[%74, %c0_22, %c0_23] : memref<8x8x128xf32, #tpu.memory_space<vmem>>, vector<1x8x128xf32>
    %76 = vector.shape_cast %75 : vector<1x8x128xf32> to vector<8x128xf32>
    %cst_24 = arith.constant dense<0.000000e+00> : vector<8x128xf32>
    %77 = tpu.matmul %69, %3, %cst_24 {dimension_numbers = #tpu.dot_dimension_numbers<[1], [0], [0], [1], [0, 0, 1, 1], [], []>} : vector<8x32xf32>, vector<32x128xf32>, vector<8x128xf32> -> vector<8x128xf32>
    %78 = arith.addf %76, %77 : vector<8x128xf32>
    %79 = vector.extract_strided_slice %78 {offsets = [0, 0], sizes = [8, 32], strides = [1, 1]} : vector<8x128xf32> to vector<8x32xf32>
    %80 = arith.negf %79 : vector<8x32xf32>
    %81 = math.exp %80 : vector<8x32xf32>
    %cst_25 = arith.constant 1.000000e+00 : f32
    %82 = vector.broadcast %cst_25 : f32 to vector<8x32xf32>
    %83 = arith.addf %82, %81 : vector<8x32xf32>
    %84 = arith.divf %82, %83 : vector<8x32xf32>
    %85 = vector.extract_strided_slice %78 {offsets = [0, 32], sizes = [8, 32], strides = [1, 1]} : vector<8x128xf32> to vector<8x32xf32>
    %86 = arith.negf %85 : vector<8x32xf32>
    %87 = math.exp %86 : vector<8x32xf32>
    %cst_26 = arith.constant 1.000000e+00 : f32
    %88 = vector.broadcast %cst_26 : f32 to vector<8x32xf32>
    %89 = arith.addf %88, %87 : vector<8x32xf32>
    %90 = arith.divf %88, %89 : vector<8x32xf32>
    %91 = vector.extract_strided_slice %78 {offsets = [0, 64], sizes = [8, 32], strides = [1, 1]} : vector<8x128xf32> to vector<8x32xf32>
    %92 = math.tanh %91 : vector<8x32xf32>
    %93 = vector.extract_strided_slice %78 {offsets = [0, 96], sizes = [8, 32], strides = [1, 1]} : vector<8x128xf32> to vector<8x32xf32>
    %94 = arith.negf %93 : vector<8x32xf32>
    %95 = math.exp %94 : vector<8x32xf32>
    %cst_27 = arith.constant 1.000000e+00 : f32
    %96 = vector.broadcast %cst_27 : f32 to vector<8x32xf32>
    %97 = arith.addf %96, %95 : vector<8x32xf32>
    %98 = arith.divf %96, %97 : vector<8x32xf32>
    %99 = arith.mulf %90, %67 : vector<8x32xf32>
    %100 = arith.mulf %84, %92 : vector<8x32xf32>
    %101 = arith.addf %99, %100 : vector<8x32xf32>
    %102 = math.tanh %101 : vector<8x32xf32>
    %103 = arith.mulf %98, %102 : vector<8x32xf32>
    %104 = arith.index_cast %c2_i32 : i32 to index
    %c0_28 = arith.constant 0 : index
    %c0_29 = arith.constant 0 : index
    %105 = vector.load %arg6[%104, %c0_28, %c0_29] : memref<8x8x32xf32, #tpu.memory_space<vmem>>, vector<1x8x32xf32>
    %106 = vector.shape_cast %105 : vector<1x8x32xf32> to vector<8x32xf32>
    %107 = vector.shape_cast %103 : vector<8x32xf32> to vector<1x8x32xf32>
    tpu.vector_store %arg6[%104, %c0_28, %c0_29], %107 {strides = array<i32>} : memref<8x8x32xf32, #tpu.memory_space<vmem>>, vector<1x8x32xf32>,
    %c3_i32 = arith.constant 3 : i32
    %108 = arith.index_cast %c3_i32 : i32 to index
    %c0_30 = arith.constant 0 : index
    %c0_31 = arith.constant 0 : index
    %109 = vector.load %arg2[%108, %c0_30, %c0_31] : memref<8x8x128xf32, #tpu.memory_space<vmem>>, vector<1x8x128xf32>
    %110 = vector.shape_cast %109 : vector<1x8x128xf32> to vector<8x128xf32>
    %cst_32 = arith.constant dense<0.000000e+00> : vector<8x128xf32>
    %111 = tpu.matmul %103, %3, %cst_32 {dimension_numbers = #tpu.dot_dimension_numbers<[1], [0], [0], [1], [0, 0, 1, 1], [], []>} : vector<8x32xf32>, vector<32x128xf32>, vector<8x128xf32> -> vector<8x128xf32>
    %112 = arith.addf %110, %111 : vector<8x128xf32>
    %113 = vector.extract_strided_slice %112 {offsets = [0, 0], sizes = [8, 32], strides = [1, 1]} : vector<8x128xf32> to vector<8x32xf32>
    %114 = arith.negf %113 : vector<8x32xf32>
    %115 = math.exp %114 : vector<8x32xf32>
    %cst_33 = arith.constant 1.000000e+00 : f32
    %116 = vector.broadcast %cst_33 : f32 to vector<8x32xf32>
    %117 = arith.addf %116, %115 : vector<8x32xf32>
    %118 = arith.divf %116, %117 : vector<8x32xf32>
    %119 = vector.extract_strided_slice %112 {offsets = [0, 32], sizes = [8, 32], strides = [1, 1]} : vector<8x128xf32> to vector<8x32xf32>
    %120 = arith.negf %119 : vector<8x32xf32>
    %121 = math.exp %120 : vector<8x32xf32>
    %cst_34 = arith.constant 1.000000e+00 : f32
    %122 = vector.broadcast %cst_34 : f32 to vector<8x32xf32>
    %123 = arith.addf %122, %121 : vector<8x32xf32>
    %124 = arith.divf %122, %123 : vector<8x32xf32>
    %125 = vector.extract_strided_slice %112 {offsets = [0, 64], sizes = [8, 32], strides = [1, 1]} : vector<8x128xf32> to vector<8x32xf32>
    %126 = math.tanh %125 : vector<8x32xf32>
    %127 = vector.extract_strided_slice %112 {offsets = [0, 96], sizes = [8, 32], strides = [1, 1]} : vector<8x128xf32> to vector<8x32xf32>
    %128 = arith.negf %127 : vector<8x32xf32>
    %129 = math.exp %128 : vector<8x32xf32>
    %cst_35 = arith.constant 1.000000e+00 : f32
    %130 = vector.broadcast %cst_35 : f32 to vector<8x32xf32>
    %131 = arith.addf %130, %129 : vector<8x32xf32>
    %132 = arith.divf %130, %131 : vector<8x32xf32>
    %133 = arith.mulf %124, %101 : vector<8x32xf32>
    %134 = arith.mulf %118, %126 : vector<8x32xf32>
    %135 = arith.addf %133, %134 : vector<8x32xf32>
    %136 = math.tanh %135 : vector<8x32xf32>
    %137 = arith.mulf %132, %136 : vector<8x32xf32>
    %138 = arith.index_cast %c3_i32 : i32 to index
    %c0_36 = arith.constant 0 : index
    %c0_37 = arith.constant 0 : index
    %139 = vector.load %arg6[%138, %c0_36, %c0_37] : memref<8x8x32xf32, #tpu.memory_space<vmem>>, vector<1x8x32xf32>
    %140 = vector.shape_cast %139 : vector<1x8x32xf32> to vector<8x32xf32>
    %141 = vector.shape_cast %137 : vector<8x32xf32> to vector<1x8x32xf32>
    tpu.vector_store %arg6[%138, %c0_36, %c0_37], %141 {strides = array<i32>} : memref<8x8x32xf32, #tpu.memory_space<vmem>>, vector<1x8x32xf32>,
    %c4_i32 = arith.constant 4 : i32
    %142 = arith.index_cast %c4_i32 : i32 to index
    %c0_38 = arith.constant 0 : index
    %c0_39 = arith.constant 0 : index
    %143 = vector.load %arg2[%142, %c0_38, %c0_39] : memref<8x8x128xf32, #tpu.memory_space<vmem>>, vector<1x8x128xf32>
    %144 = vector.shape_cast %143 : vector<1x8x128xf32> to vector<8x128xf32>
    %cst_40 = arith.constant dense<0.000000e+00> : vector<8x128xf32>
    %145 = tpu.matmul %137, %3, %cst_40 {dimension_numbers = #tpu.dot_dimension_numbers<[1], [0], [0], [1], [0, 0, 1, 1], [], []>} : vector<8x32xf32>, vector<32x128xf32>, vector<8x128xf32> -> vector<8x128xf32>
    %146 = arith.addf %144, %145 : vector<8x128xf32>
    %147 = vector.extract_strided_slice %146 {offsets = [0, 0], sizes = [8, 32], strides = [1, 1]} : vector<8x128xf32> to vector<8x32xf32>
    %148 = arith.negf %147 : vector<8x32xf32>
    %149 = math.exp %148 : vector<8x32xf32>
    %cst_41 = arith.constant 1.000000e+00 : f32
    %150 = vector.broadcast %cst_41 : f32 to vector<8x32xf32>
    %151 = arith.addf %150, %149 : vector<8x32xf32>
    %152 = arith.divf %150, %151 : vector<8x32xf32>
    %153 = vector.extract_strided_slice %146 {offsets = [0, 32], sizes = [8, 32], strides = [1, 1]} : vector<8x128xf32> to vector<8x32xf32>
    %154 = arith.negf %153 : vector<8x32xf32>
    %155 = math.exp %154 : vector<8x32xf32>
    %cst_42 = arith.constant 1.000000e+00 : f32
    %156 = vector.broadcast %cst_42 : f32 to vector<8x32xf32>
    %157 = arith.addf %156, %155 : vector<8x32xf32>
    %158 = arith.divf %156, %157 : vector<8x32xf32>
    %159 = vector.extract_strided_slice %146 {offsets = [0, 64], sizes = [8, 32], strides = [1, 1]} : vector<8x128xf32> to vector<8x32xf32>
    %160 = math.tanh %159 : vector<8x32xf32>
    %161 = vector.extract_strided_slice %146 {offsets = [0, 96], sizes = [8, 32], strides = [1, 1]} : vector<8x128xf32> to vector<8x32xf32>
    %162 = arith.negf %161 : vector<8x32xf32>
    %163 = math.exp %162 : vector<8x32xf32>
    %cst_43 = arith.constant 1.000000e+00 : f32
    %164 = vector.broadcast %cst_43 : f32 to vector<8x32xf32>
    %165 = arith.addf %164, %163 : vector<8x32xf32>
    %166 = arith.divf %164, %165 : vector<8x32xf32>
    %167 = arith.mulf %158, %135 : vector<8x32xf32>
    %168 = arith.mulf %152, %160 : vector<8x32xf32>
    %169 = arith.addf %167, %168 : vector<8x32xf32>
    %170 = math.tanh %169 : vector<8x32xf32>
    %171 = arith.mulf %166, %170 : vector<8x32xf32>
    %172 = arith.index_cast %c4_i32 : i32 to index
    %c0_44 = arith.constant 0 : index
    %c0_45 = arith.constant 0 : index
    %173 = vector.load %arg6[%172, %c0_44, %c0_45] : memref<8x8x32xf32, #tpu.memory_space<vmem>>, vector<1x8x32xf32>
    %174 = vector.shape_cast %173 : vector<1x8x32xf32> to vector<8x32xf32>
    %175 = vector.shape_cast %171 : vector<8x32xf32> to vector<1x8x32xf32>
    tpu.vector_store %arg6[%172, %c0_44, %c0_45], %175 {strides = array<i32>} : memref<8x8x32xf32, #tpu.memory_space<vmem>>, vector<1x8x32xf32>,
    %c5_i32 = arith.constant 5 : i32
    %176 = arith.index_cast %c5_i32 : i32 to index
    %c0_46 = arith.constant 0 : index
    %c0_47 = arith.constant 0 : index
    %177 = vector.load %arg2[%176, %c0_46, %c0_47] : memref<8x8x128xf32, #tpu.memory_space<vmem>>, vector<1x8x128xf32>
    %178 = vector.shape_cast %177 : vector<1x8x128xf32> to vector<8x128xf32>
    %cst_48 = arith.constant dense<0.000000e+00> : vector<8x128xf32>
    %179 = tpu.matmul %171, %3, %cst_48 {dimension_numbers = #tpu.dot_dimension_numbers<[1], [0], [0], [1], [0, 0, 1, 1], [], []>} : vector<8x32xf32>, vector<32x128xf32>, vector<8x128xf32> -> vector<8x128xf32>
    %180 = arith.addf %178, %179 : vector<8x128xf32>
    %181 = vector.extract_strided_slice %180 {offsets = [0, 0], sizes = [8, 32], strides = [1, 1]} : vector<8x128xf32> to vector<8x32xf32>
    %182 = arith.negf %181 : vector<8x32xf32>
    %183 = math.exp %182 : vector<8x32xf32>
    %cst_49 = arith.constant 1.000000e+00 : f32
    %184 = vector.broadcast %cst_49 : f32 to vector<8x32xf32>
    %185 = arith.addf %184, %183 : vector<8x32xf32>
    %186 = arith.divf %184, %185 : vector<8x32xf32>
    %187 = vector.extract_strided_slice %180 {offsets = [0, 32], sizes = [8, 32], strides = [1, 1]} : vector<8x128xf32> to vector<8x32xf32>
    %188 = arith.negf %187 : vector<8x32xf32>
    %189 = math.exp %188 : vector<8x32xf32>
    %cst_50 = arith.constant 1.000000e+00 : f32
    %190 = vector.broadcast %cst_50 : f32 to vector<8x32xf32>
    %191 = arith.addf %190, %189 : vector<8x32xf32>
    %192 = arith.divf %190, %191 : vector<8x32xf32>
    %193 = vector.extract_strided_slice %180 {offsets = [0, 64], sizes = [8, 32], strides = [1, 1]} : vector<8x128xf32> to vector<8x32xf32>
    %194 = math.tanh %193 : vector<8x32xf32>
    %195 = vector.extract_strided_slice %180 {offsets = [0, 96], sizes = [8, 32], strides = [1, 1]} : vector<8x128xf32> to vector<8x32xf32>
    %196 = arith.negf %195 : vector<8x32xf32>
    %197 = math.exp %196 : vector<8x32xf32>
    %cst_51 = arith.constant 1.000000e+00 : f32
    %198 = vector.broadcast %cst_51 : f32 to vector<8x32xf32>
    %199 = arith.addf %198, %197 : vector<8x32xf32>
    %200 = arith.divf %198, %199 : vector<8x32xf32>
    %201 = arith.mulf %192, %169 : vector<8x32xf32>
    %202 = arith.mulf %186, %194 : vector<8x32xf32>
    %203 = arith.addf %201, %202 : vector<8x32xf32>
    %204 = math.tanh %203 : vector<8x32xf32>
    %205 = arith.mulf %200, %204 : vector<8x32xf32>
    %206 = arith.index_cast %c5_i32 : i32 to index
    %c0_52 = arith.constant 0 : index
    %c0_53 = arith.constant 0 : index
    %207 = vector.load %arg6[%206, %c0_52, %c0_53] : memref<8x8x32xf32, #tpu.memory_space<vmem>>, vector<1x8x32xf32>
    %208 = vector.shape_cast %207 : vector<1x8x32xf32> to vector<8x32xf32>
    %209 = vector.shape_cast %205 : vector<8x32xf32> to vector<1x8x32xf32>
    tpu.vector_store %arg6[%206, %c0_52, %c0_53], %209 {strides = array<i32>} : memref<8x8x32xf32, #tpu.memory_space<vmem>>, vector<1x8x32xf32>,
    %c6_i32 = arith.constant 6 : i32
    %210 = arith.index_cast %c6_i32 : i32 to index
    %c0_54 = arith.constant 0 : index
    %c0_55 = arith.constant 0 : index
    %211 = vector.load %arg2[%210, %c0_54, %c0_55] : memref<8x8x128xf32, #tpu.memory_space<vmem>>, vector<1x8x128xf32>
    %212 = vector.shape_cast %211 : vector<1x8x128xf32> to vector<8x128xf32>
    %cst_56 = arith.constant dense<0.000000e+00> : vector<8x128xf32>
    %213 = tpu.matmul %205, %3, %cst_56 {dimension_numbers = #tpu.dot_dimension_numbers<[1], [0], [0], [1], [0, 0, 1, 1], [], []>} : vector<8x32xf32>, vector<32x128xf32>, vector<8x128xf32> -> vector<8x128xf32>
    %214 = arith.addf %212, %213 : vector<8x128xf32>
    %215 = vector.extract_strided_slice %214 {offsets = [0, 0], sizes = [8, 32], strides = [1, 1]} : vector<8x128xf32> to vector<8x32xf32>
    %216 = arith.negf %215 : vector<8x32xf32>
    %217 = math.exp %216 : vector<8x32xf32>
    %cst_57 = arith.constant 1.000000e+00 : f32
    %218 = vector.broadcast %cst_57 : f32 to vector<8x32xf32>
    %219 = arith.addf %218, %217 : vector<8x32xf32>
    %220 = arith.divf %218, %219 : vector<8x32xf32>
    %221 = vector.extract_strided_slice %214 {offsets = [0, 32], sizes = [8, 32], strides = [1, 1]} : vector<8x128xf32> to vector<8x32xf32>
    %222 = arith.negf %221 : vector<8x32xf32>
    %223 = math.exp %222 : vector<8x32xf32>
    %cst_58 = arith.constant 1.000000e+00 : f32
    %224 = vector.broadcast %cst_58 : f32 to vector<8x32xf32>
    %225 = arith.addf %224, %223 : vector<8x32xf32>
    %226 = arith.divf %224, %225 : vector<8x32xf32>
    %227 = vector.extract_strided_slice %214 {offsets = [0, 64], sizes = [8, 32], strides = [1, 1]} : vector<8x128xf32> to vector<8x32xf32>
    %228 = math.tanh %227 : vector<8x32xf32>
    %229 = vector.extract_strided_slice %214 {offsets = [0, 96], sizes = [8, 32], strides = [1, 1]} : vector<8x128xf32> to vector<8x32xf32>
    %230 = arith.negf %229 : vector<8x32xf32>
    %231 = math.exp %230 : vector<8x32xf32>
    %cst_59 = arith.constant 1.000000e+00 : f32
    %232 = vector.broadcast %cst_59 : f32 to vector<8x32xf32>
    %233 = arith.addf %232, %231 : vector<8x32xf32>
    %234 = arith.divf %232, %233 : vector<8x32xf32>
    %235 = arith.mulf %226, %203 : vector<8x32xf32>
    %236 = arith.mulf %220, %228 : vector<8x32xf32>
    %237 = arith.addf %235, %236 : vector<8x32xf32>
    %238 = math.tanh %237 : vector<8x32xf32>
    %239 = arith.mulf %234, %238 : vector<8x32xf32>
    %240 = arith.index_cast %c6_i32 : i32 to index
    %c0_60 = arith.constant 0 : index
    %c0_61 = arith.constant 0 : index
    %241 = vector.load %arg6[%240, %c0_60, %c0_61] : memref<8x8x32xf32, #tpu.memory_space<vmem>>, vector<1x8x32xf32>
    %242 = vector.shape_cast %241 : vector<1x8x32xf32> to vector<8x32xf32>
    %243 = vector.shape_cast %239 : vector<8x32xf32> to vector<1x8x32xf32>
    tpu.vector_store %arg6[%240, %c0_60, %c0_61], %243 {strides = array<i32>} : memref<8x8x32xf32, #tpu.memory_space<vmem>>, vector<1x8x32xf32>,
    %c7_i32 = arith.constant 7 : i32
    %244 = arith.index_cast %c7_i32 : i32 to index
    %c0_62 = arith.constant 0 : index
    %c0_63 = arith.constant 0 : index
    %245 = vector.load %arg2[%244, %c0_62, %c0_63] : memref<8x8x128xf32, #tpu.memory_space<vmem>>, vector<1x8x128xf32>
    %246 = vector.shape_cast %245 : vector<1x8x128xf32> to vector<8x128xf32>
    %cst_64 = arith.constant dense<0.000000e+00> : vector<8x128xf32>
    %247 = tpu.matmul %239, %3, %cst_64 {dimension_numbers = #tpu.dot_dimension_numbers<[1], [0], [0], [1], [0, 0, 1, 1], [], []>} : vector<8x32xf32>, vector<32x128xf32>, vector<8x128xf32> -> vector<8x128xf32>
    %248 = arith.addf %246, %247 : vector<8x128xf32>
    %249 = vector.extract_strided_slice %248 {offsets = [0, 0], sizes = [8, 32], strides = [1, 1]} : vector<8x128xf32> to vector<8x32xf32>
    %250 = arith.negf %249 : vector<8x32xf32>
    %251 = math.exp %250 : vector<8x32xf32>
    %cst_65 = arith.constant 1.000000e+00 : f32
    %252 = vector.broadcast %cst_65 : f32 to vector<8x32xf32>
    %253 = arith.addf %252, %251 : vector<8x32xf32>
    %254 = arith.divf %252, %253 : vector<8x32xf32>
    %255 = vector.extract_strided_slice %248 {offsets = [0, 32], sizes = [8, 32], strides = [1, 1]} : vector<8x128xf32> to vector<8x32xf32>
    %256 = arith.negf %255 : vector<8x32xf32>
    %257 = math.exp %256 : vector<8x32xf32>
    %cst_66 = arith.constant 1.000000e+00 : f32
    %258 = vector.broadcast %cst_66 : f32 to vector<8x32xf32>
    %259 = arith.addf %258, %257 : vector<8x32xf32>
    %260 = arith.divf %258, %259 : vector<8x32xf32>
    %261 = vector.extract_strided_slice %248 {offsets = [0, 64], sizes = [8, 32], strides = [1, 1]} : vector<8x128xf32> to vector<8x32xf32>
    %262 = math.tanh %261 : vector<8x32xf32>
    %263 = vector.extract_strided_slice %248 {offsets = [0, 96], sizes = [8, 32], strides = [1, 1]} : vector<8x128xf32> to vector<8x32xf32>
    %264 = arith.negf %263 : vector<8x32xf32>
    %265 = math.exp %264 : vector<8x32xf32>
    %cst_67 = arith.constant 1.000000e+00 : f32
    %266 = vector.broadcast %cst_67 : f32 to vector<8x32xf32>
    %267 = arith.addf %266, %265 : vector<8x32xf32>
    %268 = arith.divf %266, %267 : vector<8x32xf32>
    %269 = arith.mulf %260, %237 : vector<8x32xf32>
    %270 = arith.mulf %254, %262 : vector<8x32xf32>
    %271 = arith.addf %269, %270 : vector<8x32xf32>
    %272 = math.tanh %271 : vector<8x32xf32>
    %273 = arith.mulf %268, %272 : vector<8x32xf32>
    %274 = arith.index_cast %c7_i32 : i32 to index
    %c0_68 = arith.constant 0 : index
    %c0_69 = arith.constant 0 : index
    %275 = vector.load %arg6[%274, %c0_68, %c0_69] : memref<8x8x32xf32, #tpu.memory_space<vmem>>, vector<1x8x32xf32>
    %276 = vector.shape_cast %275 : vector<1x8x32xf32> to vector<8x32xf32>
    %277 = vector.shape_cast %273 : vector<8x32xf32> to vector<1x8x32xf32>
    tpu.vector_store %arg6[%274, %c0_68, %c0_69], %277 {strides = array<i32>} : memref<8x8x32xf32, #tpu.memory_space<vmem>>, vector<1x8x32xf32>,
    %c8_i32 = arith.constant 8 : i32
    %c0_70 = arith.constant 0 : index
    %c0_71 = arith.constant 0 : index
    %278 = vector.load %arg8[%c0_70, %c0_71] : memref<8x32xf32, #tpu.memory_space<vmem>>, vector<8x32xf32>
    tpu.vector_store %arg8[%c0_70, %c0_71], %273 {strides = array<i32>} : memref<8x32xf32, #tpu.memory_space<vmem>>, vector<8x32xf32>,
    %c0_72 = arith.constant 0 : index
    %c0_73 = arith.constant 0 : index
    %279 = vector.load %arg9[%c0_72, %c0_73] : memref<8x32xf32, #tpu.memory_space<vmem>>, vector<8x32xf32>
    tpu.vector_store %arg9[%c0_72, %c0_73], %271 {strides = array<i32>} : memref<8x32xf32, #tpu.memory_space<vmem>>, vector<8x32xf32>,
    %c0_i32_74 = arith.constant 0 : i32
    %280 = arith.cmpi eq, %arg1, %c0_i32_74 : i32
    %281 = arith.extui %280 : i1 to i32
    %c0_i32_75 = arith.constant 0 : i32
    %282 = arith.cmpi ne, %281, %c0_i32_75 : i32
    scf.if %282 {
      %c0_76 = arith.constant 0 : index
      %c0_77 = arith.constant 0 : index
      %283 = vector.load %arg7[%c0_76, %c0_77] : memref<8x32xf32, #tpu.memory_space<vmem>>, vector<8x32xf32>
      tpu.vector_store %arg7[%c0_76, %c0_77], %271 {strides = array<i32>} : memref<8x32xf32, #tpu.memory_space<vmem>>, vector<8x32xf32>,
    } else {
    }
    return
  }
  func.func @transform_0(%arg0: i32, %arg1: i32) -> (i32, i32, i32) {
    %c0_i32 = arith.constant 0 : i32
    %c0_i32_0 = arith.constant 0 : i32
    return %arg1, %arg0, %c0_i32 : i32, i32, i32
  }
  func.func @transform_1(%arg0: i32, %arg1: i32) -> (i32, i32) {
    %c0_i32 = arith.constant 0 : i32
    %c0_i32_0 = arith.constant 0 : i32
    %c0_i32_1 = arith.constant 0 : i32
    return %c0_i32, %c0_i32_0 : i32, i32
  }
  func.func @transform_2(%arg0: i32, %arg1: i32) -> (i32, i32) {
    %c0_i32 = arith.constant 0 : i32
    %c0_i32_0 = arith.constant 0 : i32
    return %arg0, %c0_i32 : i32, i32
  }
  func.func @transform_3(%arg0: i32, %arg1: i32) -> (i32, i32) {
    %c0_i32 = arith.constant 0 : i32
    %c0_i32_0 = arith.constant 0 : i32
    return %arg0, %c0_i32 : i32, i32
  }
  func.func @transform_4(%arg0: i32, %arg1: i32) -> (i32, i32, i32) {
    %c0_i32 = arith.constant 0 : i32
    %c0_i32_0 = arith.constant 0 : i32
    return %arg1, %arg0, %c0_i32 : i32, i32, i32
  }
  func.func @transform_5(%arg0: i32, %arg1: i32) -> (i32, i32) {
    %c0_i32 = arith.constant 0 : i32
    %c0_i32_0 = arith.constant 0 : i32
    return %arg0, %c0_i32 : i32, i32
  }
}

</mosaic_0001>

<bundles_post_ra>
// kernel: tpu_custom_call.1
= control target key start
LH: loop header
LB: loop body
LE: loop exit
PB: predicated region body
PF: predicated region fallthrough
CT: control target
= control target key end

     0   :  { %11 = vsyncpa [#allocation5], 0  ;;  %s1537_s0 = inlined_call_operand.hbm [shape: f32[8,8,128], index: 0, kind: input, shape index: {}]   ;;  %s1538_s1 = inlined_call_operand.hbm [shape: f32[32,128], index: 1, kind: input, shape index: {}]   ;;  %s1539_s2 = inlined_call_operand.hbm [shape: f32[8,32], index: 2, kind: input, shape index: {}]   ;;  %s1540_s3 = inlined_call_operand.hbm [shape: f32[8,32], index: 3, kind: input, shape index: {}]   ;;  %s1541_s4 = inlined_call_operand.hbm [shape: f32[8,8,32], index: 4, kind: output, shape index: {0}]   ;;  %s1542_s5 = inlined_call_operand.hbm [shape: f32[8,32], index: 5, kind: output, shape index: {1}]  }
   0x1   :  { %12 = vsyncpa [#allocation8], 0 }
   0x2   :  { %13 = vsyncpa [#allocation11], 0 }
   0x3   :  { %14 = vsyncpa [#allocation6], 0 }
   0x4   :  { %15 = vsyncpa [#allocation14], 0  ;;  %s1325_s18 = smov [#allocation7]   ;;  %s1326_s20 = smov [#allocation4]  }
   0x5   :  { %s33_s19 = sshll.u32 %s1325_s18, 4  ;;  %s21_s21 = sshll.u32 %s1326_s20, 4  ;;  %s34_s19 = int_to_ptr.vmem [resolvable:$true] %s33_s19  ;;  %s22_s21 = int_to_ptr.vmem [resolvable:$true] %s21_s21 }
   0x6   :  { %s1203_s22 = scalar_lea.vmem %s34_s19, 512  ;;  %p1208_p1 = scmp.lt.s32.totalorder %s34_s19, %s34_s19 }
   0x7   :  { %p1204_p0 = scmp.ne.s32.totalorder %s34_s19, %s1203_s22  ;;  %p1209_p2 = scmp.lt.s32.totalorder %s1203_s22, %s1203_s22 }
   0x9   :  { %p1210_p3 = por %p1209_p2, %p1208_p1 }
   0xb   :  { %p1211_p4 = pnand %p1210_p3, %p1204_p0 }
   0xd   :  { %1214 = shalt.err (!%p1211_p4)
}
   0xe   :  { %s1327_s23 = smov 128   ;;  %s1328_s24 = smov 8  }
   0xf   :  { %39 = dma.hbm_to_vmem [thread:$0]  %s1538_s1, 512, %s34_s19, [#allocation8], %s1327_s23, %s1327_s23, %s1328_s24  }
  0x10   :  { %s1223_s27 = scalar_lea.vmem %s22_s21, 1024  ;;  %p1228_p6 = scmp.lt.s32.totalorder %s22_s21, %s22_s21 }
  0x11   :  { %p1224_p5 = scmp.ne.s32.totalorder %s22_s21, %s1223_s27  ;;  %p1229_p7 = scmp.lt.s32.totalorder %s1223_s27, %s1223_s27 }
  0x13   :  { %p1230_p8 = por %p1229_p7, %p1228_p6 }
  0x15   :  { %p1231_p9 = pnand %p1230_p8, %p1224_p5 }
  0x17   :  { %1234 = shalt.err (!%p1231_p9)
}
  0x18   :  { %27 = dma.hbm_to_vmem [thread:$0]  %s1537_s0, 1024, %s22_s21, [#allocation5], %s1327_s23, %s1327_s23, %s1328_s24  }
  0x19   :  { %s1329_s30 = smov [#allocation9]   ;;  %s1330_s7 = smov [#allocation10]  }
  0x1a   :  { %s46_s6 = sshll.u32 %s1329_s30, 4  ;;  %s56_s8 = sshll.u32 %s1330_s7, 4  ;;  %s47_s6 = int_to_ptr.vmem [resolvable:$true] %s46_s6  ;;  %s57_s8 = int_to_ptr.vmem [resolvable:$true] %s56_s8 }
  0x1b   :  { %s1243_s1 = scalar_lea.vmem %s47_s6, 128  ;;  %p1248_p11 = scmp.lt.s32.totalorder %s47_s6, %s47_s6 }
  0x1c   :  { %p1244_p10 = scmp.ne.s32.totalorder %s47_s6, %s1243_s1  ;;  %p1249_p12 = scmp.lt.s32.totalorder %s1243_s1, %s1243_s1 }
  0x1e   :  { %p1250_p13 = por %p1249_p12, %p1248_p11 }
  0x20   :  { %p1251_p0 = pnand %p1250_p13, %p1244_p10 }
  0x22   :  { %1254 = shalt.err (!%p1251_p0)
}
  0x23   :  { %49 = dma.hbm_to_vmem [thread:$0]  %s1539_s2, 128, %s47_s6, [#allocation8]  }
  0x24   :  { %s1263_s11 = scalar_lea.vmem %s57_s8, 128  ;;  %p1268_p2 = scmp.lt.s32.totalorder %s57_s8, %s57_s8 }
  0x25   :  { %p1264_p1 = scmp.ne.s32.totalorder %s57_s8, %s1263_s11  ;;  %p1269_p3 = scmp.lt.s32.totalorder %s1263_s11, %s1263_s11 }
  0x27   :  { %p1270_p4 = por %p1269_p3, %p1268_p2 }
  0x29   :  { %p1271_p5 = pnand %p1270_p4, %p1264_p1 }
  0x2b   :  { %1274 = shalt.err (!%p1271_p5)
}
  0x2c   :  { %59 = dma.hbm_to_vmem [thread:$0]  %s1540_s3, 128, %s57_s8, [#allocation11]  }
  0x2d   :  { %1315 = dma.done.wait [#allocation5], 1024  }
  0x2e   :  { %1316 = vsyncadd [#allocation5], 4294966272 }
  0x2f   :  { %1317 = dma.done.wait [#allocation8], 640  }
  0x30   :  { %1318 = vsyncadd [#allocation8], 4294966656 }
  0x31   :  { %1319 = dma.done.wait [#allocation11], 128  }
  0x32   :  { %1320 = vsyncadd [#allocation11], 4294967168  ;;  %v1331_v0 = vmov 0.0   ;;  %vm1332_vm0 = vmmov 0   ;;  %vm77_vm1 = vcmask 261120   ;;  %v1392_v1 = vld [vmem:[#allocation7 + $0x18] sm:$0xff] }
  0x33   :  { %1030 = vmatprep.subr.mxu0 %v1331_v0  ;;  %1038 = vmatprep.mubr.msk.f32.mxu0 %vm1332_vm0, %v1331_v0  ;;  %v1394_v2 = vld [vmem:[#allocation7 + $0x10] sm:$0xff]  ;;  %v76_v3 = vld [vmem:[#allocation9] sm:$0xff]  ;;  %v1399_v4 = vld [vmem:[#allocation7 + $0x8] sm:$0xff]  ;;  %s1333_s2 = smov 64   ;;  %s1334_s3 = smov 32  }
  0x34   :  { %1041 = vmatprep.subr.mxu1 %v1331_v0  ;;  %1049 = vmatprep.mubr.msk.f32.mxu1 %vm1332_vm0, %v1331_v0  ;;  %78 = vst.msk [vmem:[#allocation2] sm:$0xff] %vm77_vm1, %v76_v3  ;;  %v1406_v5 = vld [vmem:[#allocation7] sm:$0xff]  ;;  %v79_v7 = vld [vmem:[#allocation10] sm:$0xff]  ;;  %v302_v46 = vld [vmem:[#allocation4 + $0x10] sm:$0xff]  ;;  %s1335_s13 = smov 96   ;;  %s1336_s14 = smov [#allocation13]  }
  0x35   :  { %1031 = vmatpush3.msra.mxu0 %v1392_v1  ;;  %1042 = vmatpush3.msra.mxu1 %v1392_v1  ;;  %80 = vst.msk [vmem:[#allocation3] sm:$0xff] %vm77_vm1, %v79_v7  ;;  %v87_v8 = vld [vmem:[#allocation4] sm:$0xff]  ;;  %v197_v28 = vld [vmem:[#allocation4 + $0x8] sm:$0xff]  ;;  %v407_v3 = vld [vmem:[#allocation4 + $0x18] sm:$0xff]  ;;  %s959_s15 = sshll.u32 %s1336_s14, 4  ;;  %s960_s15 = int_to_ptr.vmem [resolvable:$true] %s959_s15 }
  0x36   :  { %1032 = vmatprep.subr.mxu0 %v1331_v0  ;;  %1043 = vmatprep.subr.mxu1 %v1331_v0  ;;  %s1275_s16 = scalar_lea.vmem %s960_s15, 128  ;;  %p1280_p7 = scmp.lt.s32.totalorder %s960_s15, %s960_s15 }
  0x37   :  { %1033 = vmatpush3.msra.mxu0 %v1394_v2  ;;  %1044 = vmatpush3.msra.mxu1 %v1394_v2  ;;  %p1276_p6 = scmp.ne.s32.totalorder %s960_s15, %s1275_s16  ;;  %p1281_p8 = scmp.lt.s32.totalorder %s1275_s16, %s1275_s16 }
  0x38   :  { %1034 = vmatprep.subr.mxu0 %v1331_v0  ;;  %1045 = vmatprep.subr.mxu1 %v1331_v0 }
  0x39   :  { %1035 = vmatpush3.msra.mxu0 %v1399_v4  ;;  %1046 = vmatpush3.msra.mxu1 %v1399_v4  ;;  %p1282_p9 = por %p1281_p8, %p1280_p7 }
  0x3a   :  { %1036 = vmatprep.subr.mxu0 %v1331_v0  ;;  %1047 = vmatprep.subr.mxu1 %v1331_v0 }
  0x3b   :  { %1037 = vmatpush3.msra.mxu0 %v1406_v5  ;;  %1048 = vmatpush3.msra.mxu1 %v1406_v5  ;;  %v85_v6 = vld [vmem:[#allocation2] sm:$0xff]  ;;  %p1283_p10 = pnand %p1282_p9, %p1276_p6 }
  0x3c   :  { %1052 = vmatprep.subr.mxu0 %v1331_v0  ;;  %1063 = vmatprep.subr.mxu1 %v1331_v0  ;;  %v86_v13 = vld [vmem:[#allocation3] sm:$0xff] }
  0x3d   :  { %1039 = vmatmul.mubr.msk.f32.vlgmr.msra.gmra.mxu0 %vm77_vm1, %v85_v6 }
  0x3e   :  { %1053 = vmatpush3.msra.mxu0 %v1392_v1  ;;  %1060 = vmatprep.mubr.msk.f32.mxu0 %vm1332_vm0, %v1331_v0 }
  0x3f   :  { %1054 = vmatprep.subr.mxu0 %v1331_v0 }
  0x40   :  { %1055 = vmatpush3.msra.mxu0 %v1394_v2 }
  0x41   :  { %1056 = vmatprep.subr.mxu0 %v1331_v0 }
  0x42   :  { %1057 = vmatpush3.msra.mxu0 %v1399_v4 }
  0x43   :  { %1058 = vmatprep.subr.mxu0 %v1331_v0 }
  0x44   :  { %1059 = vmatpush3.msra.mxu0 %v1406_v5 }
  0x45   :  { %1074 = vmatprep.subr.mxu0 %v1331_v0 }
  0xfd   :  { %v158_v9 = vpop.f32.mrf.mxu0 }
  0xfe   :  { %v162_v10 = vadd.f32 %v158_v9, %v87_v8 }
  0xff   :  { %v1040_v11 = vpop.f32.mrf.mxu0 }
 0x100   :  { %1131 = vtanh.f32 %v162_v10  ;;  %v975_v14 = vmul.f32 -1.442695, %v162_v10 }
 0x102   :  { %1133 = vpow2.f32 %v975_v14 }
 0x10d   :  { %v1132_v12 = vpop.eup %1131 }
 0x10e   :  { %176 = vrot.lane.b32.xlu0 %v1132_v12, %s1333_s2 }
 0x10f   :  { %v1134_v15 = vpop.eup %1133 }
 0x110   :  { %v166_v16 = vadd.f32 1.0, %v1134_v15 }
 0x112   :  { %171 = vrot.lane.b32.xlu0 %v86_v13, %s1334_s3  ;;  %1135 = vrcp.f32 %v166_v16 }
 0x11f   :  { %v1136_v17 = vpop.eup %1135 }
 0x180   :  { %v177_v18 = vpop.permute.xlu0 %176 }
 0x181   :  { %v179_v19 = vmul.f32 %v1136_v17, %v177_v18 }
 0x183   :  { %181 = vrot.lane.b32.xlu1 %v179_v19, %s1334_s3 }
 0x184   :  { %v172_v20 = vpop.permute.xlu0 %171 }
 0x185   :  { %v174_v21 = vmul.f32 %v1136_v17, %v172_v20 }
 0x1f5   :  { %v182_v22 = vpop.permute.xlu1 %181 }
 0x1f6   :  { %v184_v23 = vadd.f32 %v182_v22, %v174_v21 }
 0x1f8   :  { %1137 = vtanh.f32 %v184_v23 }
 0x205   :  { %v1138_v24 = vpop.eup %1137 }
 0x206   :  { %187 = vrot.lane.b32.xlu1 %v1138_v24, %s1333_s2 }
 0x278   :  { %v188_v25 = vpop.permute.xlu1 %187 }
 0x279   :  { %v190_v26 = vmul.f32 %v1136_v17, %v188_v25 }
 0x27b   :  { %192 = vrot.lane.b32.xlu0 %v190_v26, %s1334_s3 }
 0x2ed   :  { %v193_v27 = vpop.permute.xlu0 %192 }
 0x2ee   :  { %195 = vst.msk [vmem:[#allocation12] sm:$0xff] %vm77_vm1, %v193_v27  ;;  %1050 = vmatmul.mubr.msk.f32.vlgmr.msra.gmra.mxu1 %vm77_vm1, %v193_v27 }
 0x2ef   :  { %1064 = vmatpush3.msra.mxu1 %v1392_v1  ;;  %1071 = vmatprep.mubr.msk.f32.mxu1 %vm1332_vm0, %v1331_v0 }
 0x2f0   :  { %1065 = vmatprep.subr.mxu1 %v1331_v0 }
 0x2f1   :  { %1066 = vmatpush3.msra.mxu1 %v1394_v2 }
 0x2f2   :  { %1067 = vmatprep.subr.mxu1 %v1331_v0 }
 0x2f3   :  { %1068 = vmatpush3.msra.mxu1 %v1399_v4 }
 0x2f4   :  { %1069 = vmatprep.subr.mxu1 %v1331_v0 }
 0x2f5   :  { %1070 = vmatpush3.msra.mxu1 %v1406_v5 }
 0x2f6   :  { %1085 = vmatprep.subr.mxu1 %v1331_v0 }
 0x3ae   :  { %v266_v29 = vpop.f32.mrf.mxu1 }
 0x3af   :  { %v270_v30 = vadd.f32 %v266_v29, %v197_v28 }
 0x3b0   :  { %v1051_v31 = vpop.f32.mrf.mxu1 }
 0x3b1   :  { %1139 = vtanh.f32 %v270_v30  ;;  %v977_v33 = vmul.f32 -1.442695, %v270_v30 }
 0x3b3   :  { %1141 = vpow2.f32 %v977_v33 }
 0x3be   :  { %v1140_v32 = vpop.eup %1139 }
 0x3bf   :  { %280 = vrot.lane.b32.xlu1 %v1140_v32, %s1333_s2 }
 0x3c0   :  { %v1142_v34 = vpop.eup %1141 }
 0x3c1   :  { %v274_v35 = vadd.f32 1.0, %v1142_v34 }
 0x3c3   :  { %1143 = vrcp.f32 %v274_v35 }
 0x3d0   :  { %v1144_v36 = vpop.eup %1143 }
 0x3d1   :  { %v278_v39 = vmul.f32 %v1144_v36, %v184_v23  ;;  %v512_v23 = vld [vmem:[#allocation4 + $0x20] sm:$0xff] }
 0x431   :  { %v281_v37 = vpop.permute.xlu1 %280 }
 0x432   :  { %v283_v38 = vmul.f32 %v1144_v36, %v281_v37 }
 0x434   :  { %285 = vrot.lane.b32.xlu0 %v283_v38, %s1334_s3 }
 0x4a6   :  { %v286_v40 = vpop.permute.xlu0 %285 }
 0x4a7   :  { %v288_v41 = vadd.f32 %v286_v40, %v278_v39 }
 0x4a9   :  { %1145 = vtanh.f32 %v288_v41 }
 0x4b6   :  { %v1146_v42 = vpop.eup %1145 }
 0x4b7   :  { %291 = vrot.lane.b32.xlu1 %v1146_v42, %s1333_s2 }
 0x529   :  { %v292_v43 = vpop.permute.xlu1 %291 }
 0x52a   :  { %v294_v44 = vmul.f32 %v1144_v36, %v292_v43 }
 0x52c   :  { %296 = vrot.lane.b32.xlu0 %v294_v44, %s1334_s3 }
 0x59e   :  { %v297_v45 = vpop.permute.xlu0 %296 }
 0x59f   :  { %300 = vst.msk [vmem:[#allocation12 + $0x8] sm:$0xff] %vm77_vm1, %v297_v45  ;;  %1061 = vmatmul.mubr.msk.f32.vlgmr.msra.gmra.mxu0 %vm77_vm1, %v297_v45 }
 0x5a0   :  { %1075 = vmatpush3.msra.mxu0 %v1392_v1  ;;  %1082 = vmatprep.mubr.msk.f32.mxu0 %vm1332_vm0, %v1331_v0 }
 0x5a1   :  { %1076 = vmatprep.subr.mxu0 %v1331_v0 }
 0x5a2   :  { %1077 = vmatpush3.msra.mxu0 %v1394_v2 }
 0x5a3   :  { %1078 = vmatprep.subr.mxu0 %v1331_v0 }
 0x5a4   :  { %1079 = vmatpush3.msra.mxu0 %v1399_v4 }
 0x5a5   :  { %1080 = vmatprep.subr.mxu0 %v1331_v0 }
 0x5a6   :  { %1081 = vmatpush3.msra.mxu0 %v1406_v5 }
 0x5a7   :  { %1096 = vmatprep.subr.mxu0 %v1331_v0 }
 0x65f   :  { %v371_v47 = vpop.f32.mrf.mxu0 }
 0x660   :  { %v375_v48 = vadd.f32 %v371_v47, %v302_v46 }
 0x661   :  { %v1062_v49 = vpop.f32.mrf.mxu0 }
 0x662   :  { %1147 = vtanh.f32 %v375_v48  ;;  %v979_v51 = vmul.f32 -1.442695, %v375_v48 }
 0x664   :  { %1149 = vpow2.f32 %v979_v51 }
 0x66f   :  { %v1148_v50 = vpop.eup %1147 }
 0x670   :  { %385 = vrot.lane.b32.xlu1 %v1148_v50, %s1333_s2 }
 0x671   :  { %v1150_v52 = vpop.eup %1149 }
 0x672   :  { %v379_v53 = vadd.f32 1.0, %v1150_v52 }
 0x674   :  { %1151 = vrcp.f32 %v379_v53 }
 0x681   :  { %v1152_v54 = vpop.eup %1151 }
 0x682   :  { %v383_v57 = vmul.f32 %v1152_v54, %v288_v41  ;;  %v617_v41 = vld [vmem:[#allocation4 + $0x28] sm:$0xff] }
 0x6e2   :  { %v386_v55 = vpop.permute.xlu1 %385 }
 0x6e3   :  { %v388_v56 = vmul.f32 %v1152_v54, %v386_v55 }
 0x6e5   :  { %390 = vrot.lane.b32.xlu0 %v388_v56, %s1334_s3 }
 0x757   :  { %v391_v58 = vpop.permute.xlu0 %390 }
 0x758   :  { %v393_v59 = vadd.f32 %v391_v58, %v383_v57 }
 0x75a   :  { %1153 = vtanh.f32 %v393_v59 }
 0x767   :  { %v1154_v60 = vpop.eup %1153 }
 0x768   :  { %396 = vrot.lane.b32.xlu1 %v1154_v60, %s1333_s2 }
 0x7da   :  { %v397_v61 = vpop.permute.xlu1 %396 }
 0x7db   :  { %v399_v62 = vmul.f32 %v1152_v54, %v397_v61  ;;  %v722_v54 = vld [vmem:[#allocation4 + $0x30] sm:$0xff] }
 0x7dd   :  { %401 = vrot.lane.b32.xlu0 %v399_v62, %s1334_s3 }
 0x84f   :  { %v402_v63 = vpop.permute.xlu0 %401 }
 0x850   :  { %405 = vst.msk [vmem:[#allocation12 + $0x10] sm:$0xff] %vm77_vm1, %v402_v63  ;;  %1072 = vmatmul.mubr.msk.f32.vlgmr.msra.gmra.mxu1 %vm77_vm1, %v402_v63 }
 0x851   :  { %1086 = vmatpush3.msra.mxu1 %v1392_v1  ;;  %1093 = vmatprep.mubr.msk.f32.mxu1 %vm1332_vm0, %v1331_v0 }
 0x852   :  { %1087 = vmatprep.subr.mxu1 %v1331_v0 }
 0x853   :  { %1088 = vmatpush3.msra.mxu1 %v1394_v2 }
 0x854   :  { %1089 = vmatprep.subr.mxu1 %v1331_v0 }
 0x855   :  { %1090 = vmatpush3.msra.mxu1 %v1399_v4 }
 0x856   :  { %1091 = vmatprep.subr.mxu1 %v1331_v0 }
 0x857   :  { %1092 = vmatpush3.msra.mxu1 %v1406_v5 }
 0x858   :  { %1107 = vmatprep.subr.mxu1 %v1331_v0 }
 0x910   :  { %v476_v6 = vpop.f32.mrf.mxu1 }
 0x911   :  { %v480_v7 = vadd.f32 %v476_v6, %v407_v3 }
 0x912   :  { %v1073_v8 = vpop.f32.mrf.mxu1 }
 0x913   :  { %1155 = vtanh.f32 %v480_v7  ;;  %v981_v10 = vmul.f32 -1.442695, %v480_v7 }
 0x915   :  { %1157 = vpow2.f32 %v981_v10 }
 0x920   :  { %v1156_v9 = vpop.eup %1155 }
 0x921   :  { %490 = vrot.lane.b32.xlu1 %v1156_v9, %s1333_s2 }
 0x922   :  { %v1158_v11 = vpop.eup %1157 }
 0x923   :  { %v484_v12 = vadd.f32 1.0, %v1158_v11 }
 0x925   :  { %1159 = vrcp.f32 %v484_v12 }
 0x932   :  { %v1160_v13 = vpop.eup %1159 }
 0x933   :  { %v488_v16 = vmul.f32 %v1160_v13, %v393_v59 }
 0x993   :  { %v491_v14 = vpop.permute.xlu1 %490 }
 0x994   :  { %v493_v15 = vmul.f32 %v1160_v13, %v491_v14 }
 0x996   :  { %495 = vrot.lane.b32.xlu0 %v493_v15, %s1334_s3 }
 0xa08   :  { %v496_v17 = vpop.permute.xlu0 %495 }
 0xa09   :  { %v498_v18 = vadd.f32 %v496_v17, %v488_v16 }
 0xa0b   :  { %1161 = vtanh.f32 %v498_v18 }
 0xa18   :  { %v1162_v19 = vpop.eup %1161 }
 0xa19   :  { %501 = vrot.lane.b32.xlu1 %v1162_v19, %s1333_s2 }
 0xa8b   :  { %v502_v20 = vpop.permute.xlu1 %501 }
 0xa8c   :  { %v504_v21 = vmul.f32 %v1160_v13, %v502_v20  ;;  %v827_v13 = vld [vmem:[#allocation4 + $0x38] sm:$0xff] }
 0xa8e   :  { %506 = vrot.lane.b32.xlu0 %v504_v21, %s1334_s3 }
 0xb00   :  { %v507_v22 = vpop.permute.xlu0 %506 }
 0xb01   :  { %510 = vst.msk [vmem:[#allocation12 + $0x18] sm:$0xff] %vm77_vm1, %v507_v22  ;;  %1083 = vmatmul.mubr.msk.f32.vlgmr.msra.gmra.mxu0 %vm77_vm1, %v507_v22 }
 0xb02   :  { %1097 = vmatpush3.msra.mxu0 %v1392_v1  ;;  %1104 = vmatprep.mubr.msk.f32.mxu0 %vm1332_vm0, %v1331_v0 }
 0xb03   :  { %1098 = vmatprep.subr.mxu0 %v1331_v0 }
 0xb04   :  { %1099 = vmatpush3.msra.mxu0 %v1394_v2 }
 0xb05   :  { %1100 = vmatprep.subr.mxu0 %v1331_v0 }
 0xb06   :  { %1101 = vmatpush3.msra.mxu0 %v1399_v4 }
 0xb07   :  { %1102 = vmatprep.subr.mxu0 %v1331_v0 }
 0xb08   :  { %1103 = vmatpush3.msra.mxu0 %v1406_v5 }
 0xbc1   :  { %v581_v24 = vpop.f32.mrf.mxu0 }
 0xbc2   :  { %v585_v25 = vadd.f32 %v581_v24, %v512_v23 }
 0xbc3   :  { %v1084_v26 = vpop.f32.mrf.mxu0 }
 0xbc4   :  { %1163 = vtanh.f32 %v585_v25  ;;  %v983_v28 = vmul.f32 -1.442695, %v585_v25 }
 0xbc6   :  { %1165 = vpow2.f32 %v983_v28 }
 0xbd1   :  { %v1164_v27 = vpop.eup %1163 }
 0xbd2   :  { %595 = vrot.lane.b32.xlu1 %v1164_v27, %s1333_s2 }
 0xbd3   :  { %v1166_v29 = vpop.eup %1165 }
 0xbd4   :  { %v589_v30 = vadd.f32 1.0, %v1166_v29 }
 0xbd6   :  { %1167 = vrcp.f32 %v589_v30 }
 0xbe3   :  { %v1168_v31 = vpop.eup %1167 }
 0xbe4   :  { %v593_v34 = vmul.f32 %v1168_v31, %v498_v18 }
 0xc44   :  { %v596_v32 = vpop.permute.xlu1 %595 }
 0xc45   :  { %v598_v33 = vmul.f32 %v1168_v31, %v596_v32 }
 0xc47   :  { %600 = vrot.lane.b32.xlu0 %v598_v33, %s1334_s3 }
 0xcb9   :  { %v601_v35 = vpop.permute.xlu0 %600 }
 0xcba   :  { %v603_v36 = vadd.f32 %v601_v35, %v593_v34 }
 0xcbc   :  { %1169 = vtanh.f32 %v603_v36 }
 0xcc9   :  { %v1170_v37 = vpop.eup %1169 }
 0xcca   :  { %606 = vrot.lane.b32.xlu1 %v1170_v37, %s1333_s2 }
 0xd3c   :  { %v607_v38 = vpop.permute.xlu1 %606 }
 0xd3d   :  { %v609_v39 = vmul.f32 %v1168_v31, %v607_v38 }
 0xd3f   :  { %611 = vrot.lane.b32.xlu0 %v609_v39, %s1334_s3 }
 0xdb1   :  { %v612_v40 = vpop.permute.xlu0 %611 }
 0xdb2   :  { %615 = vst.msk [vmem:[#allocation12 + $0x20] sm:$0xff] %vm77_vm1, %v612_v40  ;;  %1094 = vmatmul.mubr.msk.f32.vlgmr.msra.gmra.mxu1 %vm77_vm1, %v612_v40 }
 0xdb3   :  { %1108 = vmatpush3.msra.mxu1 %v1392_v1  ;;  %1115 = vmatprep.mubr.msk.f32.mxu1 %vm1332_vm0, %v1331_v0 }
 0xdb4   :  { %1109 = vmatprep.subr.mxu1 %v1331_v0 }
 0xdb5   :  { %1110 = vmatpush3.msra.mxu1 %v1394_v2 }
 0xdb6   :  { %1111 = vmatprep.subr.mxu1 %v1331_v0 }
 0xdb7   :  { %1112 = vmatpush3.msra.mxu1 %v1399_v4 }
 0xdb8   :  { %1113 = vmatprep.subr.mxu1 %v1331_v0 }
 0xdb9   :  { %1114 = vmatpush3.msra.mxu1 %v1406_v5 }
 0xe72   :  { %v686_v42 = vpop.f32.mrf.mxu1 }
 0xe73   :  { %v690_v43 = vadd.f32 %v686_v42, %v617_v41 }
 0xe74   :  { %v1095_v44 = vpop.f32.mrf.mxu1 }
 0xe75   :  { %1171 = vtanh.f32 %v690_v43  ;;  %v985_v45 = vmul.f32 -1.442695, %v690_v43 }
 0xe77   :  { %1173 = vpow2.f32 %v985_v45 }
 0xe82   :  { %v1172_v1 = vpop.eup %1171 }
 0xe83   :  { %700 = vrot.lane.b32.xlu1 %v1172_v1, %s1333_s2 }
 0xe84   :  { %v1174_v46 = vpop.eup %1173 }
 0xe85   :  { %v694_v2 = vadd.f32 1.0, %v1174_v46 }
 0xe87   :  { %1175 = vrcp.f32 %v694_v2 }
 0xe94   :  { %v1176_v47 = vpop.eup %1175 }
 0xe95   :  { %v698_v0 = vmul.f32 %v1176_v47, %v603_v36 }
 0xef5   :  { %v701_v48 = vpop.permute.xlu1 %700 }
 0xef6   :  { %v703_v4 = vmul.f32 %v1176_v47, %v701_v48 }
 0xef8   :  { %705 = vrot.lane.b32.xlu0 %v703_v4, %s1334_s3 }
 0xf6a   :  { %v706_v5 = vpop.permute.xlu0 %705 }
 0xf6b   :  { %v708_v49 = vadd.f32 %v706_v5, %v698_v0 }
 0xf6d   :  { %1177 = vtanh.f32 %v708_v49 }
 0xf7a   :  { %v1178_v50 = vpop.eup %1177 }
 0xf7b   :  { %711 = vrot.lane.b32.xlu1 %v1178_v50, %s1333_s2 }
 0xfed   :  { %v712_v51 = vpop.permute.xlu1 %711 }
 0xfee   :  { %v714_v52 = vmul.f32 %v1176_v47, %v712_v51 }
 0xff0   :  { %716 = vrot.lane.b32.xlu0 %v714_v52, %s1334_s3 }
0x1062   :  { %v717_v53 = vpop.permute.xlu0 %716 }
0x1063   :  { %720 = vst.msk [vmem:[#allocation12 + $0x28] sm:$0xff] %vm77_vm1, %v717_v53  ;;  %1105 = vmatmul.mubr.msk.f32.vlgmr.msra.gmra.mxu0 %vm77_vm1, %v717_v53 }
0x1123   :  { %v791_v55 = vpop.f32.mrf.mxu0 }
0x1124   :  { %v795_v56 = vadd.f32 %v791_v55, %v722_v54 }
0x1125   :  { %v1106_v57 = vpop.f32.mrf.mxu0 }
0x1126   :  { %1179 = vtanh.f32 %v795_v56  ;;  %v987_v59 = vmul.f32 -1.442695, %v795_v56 }
0x1128   :  { %1181 = vpow2.f32 %v987_v59 }
0x1133   :  { %v1180_v58 = vpop.eup %1179 }
0x1134   :  { %805 = vrot.lane.b32.xlu1 %v1180_v58, %s1333_s2 }
0x1135   :  { %v1182_v60 = vpop.eup %1181 }
0x1136   :  { %v799_v61 = vadd.f32 1.0, %v1182_v60 }
0x1138   :  { %1183 = vrcp.f32 %v799_v61 }
0x1145   :  { %v1184_v62 = vpop.eup %1183 }
0x1146   :  { %v803_v6 = vmul.f32 %v1184_v62, %v708_v49 }
0x11a6   :  { %v806_v63 = vpop.permute.xlu1 %805 }
0x11a7   :  { %v808_v3 = vmul.f32 %v1184_v62, %v806_v63 }
0x11a9   :  { %810 = vrot.lane.b32.xlu0 %v808_v3, %s1334_s3 }
0x121b   :  { %v811_v7 = vpop.permute.xlu0 %810 }
0x121c   :  { %v813_v8 = vadd.f32 %v811_v7, %v803_v6 }
0x121e   :  { %1185 = vtanh.f32 %v813_v8 }
0x122b   :  { %v1186_v9 = vpop.eup %1185 }
0x122c   :  { %816 = vrot.lane.b32.xlu1 %v1186_v9, %s1333_s2 }
0x129e   :  { %v817_v10 = vpop.permute.xlu1 %816 }
0x129f   :  { %v819_v11 = vmul.f32 %v1184_v62, %v817_v10 }
0x12a1   :  { %821 = vrot.lane.b32.xlu0 %v819_v11, %s1334_s3 }
0x1313   :  { %v822_v12 = vpop.permute.xlu0 %821 }
0x1314   :  { %825 = vst.msk [vmem:[#allocation12 + $0x30] sm:$0xff] %vm77_vm1, %v822_v12  ;;  %1116 = vmatmul.mubr.msk.f32.vlgmr.msra.gmra.mxu1 %vm77_vm1, %v822_v12 }
0x13d4   :  { %v896_v14 = vpop.f32.mrf.mxu1 }
0x13d5   :  { %v900_v15 = vadd.f32 %v896_v14, %v827_v13 }
0x13d6   :  { %v1117_v16 = vpop.f32.mrf.mxu1 }
0x13d7   :  { %1187 = vtanh.f32 %v900_v15  ;;  %v989_v18 = vmul.f32 -1.442695, %v900_v15 }
0x13d9   :  { %1189 = vpow2.f32 %v989_v18 }
0x13e4   :  { %v1188_v17 = vpop.eup %1187 }
0x13e5   :  { %910 = vrot.lane.b32.xlu1 %v1188_v17, %s1333_s2 }
0x13e6   :  { %v1190_v19 = vpop.eup %1189 }
0x13e7   :  { %v904_v20 = vadd.f32 1.0, %v1190_v19 }
0x13e9   :  { %1191 = vrcp.f32 %v904_v20 }
0x13f6   :  { %v1192_v21 = vpop.eup %1191 }
0x13f7   :  { %v908_v24 = vmul.f32 %v1192_v21, %v813_v8 }
0x1457   :  { %v911_v22 = vpop.permute.xlu1 %910 }
0x1458   :  { %v913_v23 = vmul.f32 %v1192_v21, %v911_v22 }
0x145a   :  { %915 = vrot.lane.b32.xlu0 %v913_v23, %s1334_s3 }
0x14cc   :  { %v916_v25 = vpop.permute.xlu0 %915 }
0x14cd   :  { %v918_v26 = vadd.f32 %v916_v25, %v908_v24 }
0x14cf   :  { %1193 = vtanh.f32 %v918_v26 }
0x14dc   :  { %v1194_v27 = vpop.eup %1193 }
0x14dd   :  { %921 = vrot.lane.b32.xlu1 %v1194_v27, %s1333_s2 }
0x14e1   :  { %933 = vrot.lane.b32.xlu1 %v918_v26, %s1335_s13 }
0x154f   :  { %v922_v28 = vpop.permute.xlu1 %921 }
0x1550   :  { %v924_v29 = vmul.f32 %v1192_v21, %v922_v28 }
0x1552   :  { %926 = vrot.lane.b32.xlu0 %v924_v29, %s1334_s3 }
0x1553   :  { %v934_v30 = vpop.permute.xlu1 %933 }
0x1554   :  { %936 = vst.msk [vmem:[#allocation3] sm:$0xff] %vm77_vm1, %v934_v30  ;;  %940 = vst.msk [vmem:[#allocation13] sm:$0xff] %vm77_vm1, %v934_v30 }
0x1555   :  { %1286 = shalt.err (!%p1283_p10)
}
0x1556   :  { %962 = dma.vmem_to_hbm [thread:$0]  %s960_s15, 128, %s1542_s5, [#allocation14]  }
0x1557   :  { %s1337_s19 = smov [#allocation12]  }
0x1558   :  { %s946_s20 = sshll.u32 %s1337_s19, 4  ;;  %s947_s20 = int_to_ptr.vmem [resolvable:$true] %s946_s20 }
0x1559   :  { %s1295_s21 = scalar_lea.vmem %s947_s20, 1024  ;;  %p1300_p12 = scmp.lt.s32.totalorder %s947_s20, %s947_s20 }
0x155a   :  { %p1296_p11 = scmp.ne.s32.totalorder %s947_s20, %s1295_s21  ;;  %p1301_p13 = scmp.lt.s32.totalorder %s1295_s21, %s1295_s21 }
0x155c   :  { %p1302_p0 = por %p1301_p13, %p1300_p12 }
0x155e   :  { %p1303_p1 = pnand %p1302_p0, %p1296_p11 }
0x15c4   :  { %v927_v31 = vpop.permute.xlu0 %926 }
0x15c5   :  { %930 = vst.msk [vmem:[#allocation12 + $0x38] sm:$0xff] %vm77_vm1, %v927_v31  ;;  %931 = vst.msk [vmem:[#allocation2] sm:$0xff] %vm77_vm1, %v927_v31 }
0x15c6   :  { %1306 = shalt.err (!%p1303_p1)
}
0x15c7   :  { %952 = dma.vmem_to_hbm [thread:$0]  %s947_s20, 1024, %s1541_s4, [#allocation6], %s1327_s23, %s1327_s23, %s1328_s24  }
0x15c8   :  { %1321 = dma.done.wait [#allocation6], 1024  }
0x15c9   :  { %1322 = vsyncadd [#allocation6], 4294966272 }
0x15ca   :  { %1323 = dma.done.wait [#allocation14], 128  }
0x15cb   :  { %1324 = vsyncadd [#allocation14], 4294967168 }
0x15cc   :  { %969 = vsyncpa [#allocation5], 1 }
0x15cd   :  { %970 = vsyncpa [#allocation8], 1 }
0x15ce   :  { %971 = vsyncpa [#allocation11], 1 }
0x15cf   :  { %972 = vsyncpa [#allocation6], 1 }
0x15d0   :  { %973 = vsyncpa [#allocation14], 1 }

</bundles_post_ra>
